<compile_context>
chip_gen: v6e
topology: v6e:2x2x1
jax: 0.10.0
libtpu: 0.0.40
codegen_flags: <defaults>
</compile_context>

<pallas_src>
import jax
import jax.numpy as jnp
from jax.experimental import pallas as pl
from jax.experimental.pallas import tpu as pltpu


def _square_kernel(x_ref, o_ref):
    # Elementwise square on the current VMEM tile (pure VPU work).
    x = x_ref[...]
    o_ref[...] = x * x


def _sublane_multiple(dtype) -> int:
    # Packed sublane multiple: f32 -> 8, bf16/f16 -> 16, int8/fp8 -> 32.
    return {4: 8, 2: 16, 1: 32}.get(jnp.dtype(dtype).itemsize, 8)


def _square_slab(x2d: jax.Array, *, tr: int) -> jax.Array:
    rows, cols = x2d.shape
    grid = (pl.cdiv(rows, tr),)
    return pl.pallas_call(
        _square_kernel,
        out_shape=jax.ShapeDtypeStruct((rows, cols), x2d.dtype),
        grid_spec=pltpu.PrefetchScalarGridSpec(
            num_scalar_prefetch=0,
            grid=grid,
            in_specs=[pl.BlockSpec((tr, cols), lambda i: (i, 0))],
            out_specs=pl.BlockSpec((tr, cols), lambda i: (i, 0)),
        ),
        compiler_params=pltpu.CompilerParams(
            dimension_semantics=("parallel",),
        ),
    )(x2d)


def my_square(x: jax.Array, *, target_block_bytes: int = 2 << 20) -> jax.Array:
    """Elementwise square, matching torch.Tensor.square() semantics."""
    if x.ndim == 0 or x.size == 0:
        return x * x  # nothing for a kernel to do

    n = x.size
    dtype = x.dtype
    itemsize = jnp.dtype(dtype).itemsize
    sub = _sublane_multiple(dtype)

    # ---- fast path: zero-copy reshape into an aligned, lane-dense slab ----
    slab = None
    for k in (32, 16, 8, 4, 2, 1):  # prefer wide slabs: cols = 4096 ... 128
        cols = 128 * k
        if n % cols == 0 and (n // cols) % sub == 0:
            slab = (n // cols, cols)
            break

    if slab is not None:
        rows, cols = slab
        row_bytes = cols * itemsize
        # ~target_block_bytes rows per block, rounded to the sublane packing.
        tr = max(sub, (target_block_bytes // row_bytes) // sub * sub)
        tr = min(tr, rows)
        # If one block would cover a large slab, split it so the grid has >= 2
        # parallel blocks (keeps both v7x TensorCores busy).
        if tr == rows and rows >= 2 * sub and rows * row_bytes > (1 << 20):
            half = (rows + 1) // 2
            tr = min(rows, max(sub, ((half + sub - 1) // sub) * sub))
        out2d = _square_slab(x.reshape(rows, cols), tr=tr)
        return out2d.reshape(x.shape)

    # ---- small ragged sizes: whole array as one full-dims block in VMEM ----
    if n * itemsize <= (4 << 20):
        x2d = x if x.ndim >= 2 else x.reshape(1, n)
        out = pl.pallas_call(
            _square_kernel,
            out_shape=jax.ShapeDtypeStruct(x2d.shape, dtype),
        )(x2d)
        return out.reshape(x.shape)

    # ---- large ragged sizes (rare): padded slab, large wide tiles ----
    # TODO(synk): this path costs extra HBM passes for pad/slice; only hit when
    # the element count can't be factored into an aligned (rows, 128*k) slab.
    cols = 1024
    rows = ((pl.cdiv(n, cols) + sub - 1) // sub) * sub
    x_flat = jnp.pad(jnp.ravel(x), (0, rows * cols - n))
    row_bytes = cols * itemsize
    tr = min(rows, max(sub, (target_block_bytes // row_bytes) // sub * sub))
    out2d = _square_slab(x_flat.reshape(rows, cols), tr=tr)
    return out2d.reshape(-1)[:n].reshape(x.shape)


if __name__ == "__main__":
    key = jax.random.PRNGKey(0)
    x = jax.random.normal(key, (2, 4, 16, 16), dtype=jnp.float32)

    y = my_square(x)
    y = jax.block_until_ready(y)

    # Reference check against plain JAX.
    y_ref = x * x
    assert y.shape == x.shape and y.dtype == x.dtype
    assert jnp.allclose(y, y_ref, atol=0.0, rtol=0.0)

    print("KERNEL_OK")
</pallas_src>

<mosaic_0001>
module attributes {stable_mosaic.version = 11 : i64} {
  func.func @_square_kernel(%arg0: i32, %arg1: memref<8x256xf32, #tpu.memory_space<vmem>>, %arg2: memref<8x256xf32, #tpu.memory_space<vmem>>) attributes {dimension_semantics = [#tpu.dimension_semantics<parallel>], iteration_bounds = array<i64: 1>, scalar_prefetch = 0 : i64, scratch_operands = 0 : i64, tpu.core_type = #tpu.core_type<tc>, window_params = [{transform_indices = @transform_0, window_bounds = array<i64: 8, 256>}, {transform_indices = @transform_1, window_bounds = array<i64: 8, 256>}]} {
    %c0 = arith.constant 0 : index
    %c0_0 = arith.constant 0 : index
    %0 = vector.load %arg1[%c0, %c0_0] : memref<8x256xf32, #tpu.memory_space<vmem>>, vector<8x256xf32>
    %1 = arith.mulf %0, %0 : vector<8x256xf32>
    %c0_1 = arith.constant 0 : index
    %c0_2 = arith.constant 0 : index
    %2 = vector.load %arg2[%c0_1, %c0_2] : memref<8x256xf32, #tpu.memory_space<vmem>>, vector<8x256xf32>
    tpu.vector_store %arg2[%c0_1, %c0_2], %1 {strides = array<i32>} : memref<8x256xf32, #tpu.memory_space<vmem>>, vector<8x256xf32>,
    return
  }
  func.func @transform_0(%arg0: i32) -> (i32, i32) {
    %c0_i32 = arith.constant 0 : i32
    %c0_i32_0 = arith.constant 0 : i32
    return %arg0, %c0_i32 : i32, i32
  }
  func.func @transform_1(%arg0: i32) -> (i32, i32) {
    %c0_i32 = arith.constant 0 : i32
    %c0_i32_0 = arith.constant 0 : i32
    return %arg0, %c0_i32 : i32, i32
  }
}

</mosaic_0001>

<bundles_post_ra>
// kernel: tpu_custom_call.1
= control target key start
LH: loop header
LB: loop body
LE: loop exit
PB: predicated region body
PF: predicated region fallthrough
CT: control target
= control target key end

     0   :  { %6 = vsyncpa [#allocation3], 0  ;;  %s106_s0 = inlined_call_operand.hbm [shape: f32[8,256], index: 0, kind: input, shape index: {}]   ;;  %s107_s1 = inlined_call_operand.hbm [shape: f32[8,256], index: 1, kind: output, shape index: {}]  }
   0x1   :  { %7 = vsyncpa [#allocation4], 0  ;;  %s88_s6 = smov [#allocation2]  }
   0x2   :  { %s14_s7 = sshll.u32 %s88_s6, 4  ;;  %s15_s7 = int_to_ptr.vmem [resolvable:$true] %s14_s7 }
   0x3   :  { %s52_s8 = scalar_lea.vmem %s15_s7, 256  ;;  %p57_p1 = scmp.lt.s32.totalorder %s15_s7, %s15_s7 }
   0x4   :  { %p53_p0 = scmp.ne.s32.totalorder %s15_s7, %s52_s8  ;;  %p58_p2 = scmp.lt.s32.totalorder %s52_s8, %s52_s8 }
   0x6   :  { %p59_p3 = por %p58_p2, %p57_p1 }
   0x8   :  { %p60_p4 = pnand %p59_p3, %p53_p0 }
   0xa   :  { %63 = shalt.err (!%p60_p4)
}
   0xb   :  { %17 = dma.hbm_to_vmem [thread:$0]  %s106_s0, 256, %s15_s7, [#allocation3]  }
   0xc   :  { %84 = dma.done.wait [#allocation3], 256  }
   0xd   :  { %85 = vsyncadd [#allocation3], 4294967040  ;;  %s89_s11 = smov [#allocation5]   ;;  %v21_v0 = vld [vmem:[#allocation2] sm:$0xff]  ;;  %v22_v1 = vld [vmem:[#allocation2 + $0x8] sm:$0xff] }
   0xe   :  { %s33_s12 = sshll.u32 %s89_s11, 4  ;;  %v23_v2 = vmul.f32 %v21_v0, %v21_v0  ;;  %v24_v3 = vmul.f32 %v22_v1, %v22_v1  ;;  %s34_s12 = int_to_ptr.vmem [resolvable:$true] %s33_s12 }
   0xf   :  { %s64_s13 = scalar_lea.vmem %s34_s12, 256  ;;  %p69_p6 = scmp.lt.s32.totalorder %s34_s12, %s34_s12 }
  0x10   :  { %25 = vst [vmem:[#allocation5] sm:$0xff] %v23_v2  ;;  %26 = vst [vmem:[#allocation5 + $0x8] sm:$0xff] %v24_v3  ;;  %p65_p5 = scmp.ne.s32.totalorder %s34_s12, %s64_s13  ;;  %p70_p7 = scmp.lt.s32.totalorder %s64_s13, %s64_s13 }
  0x12   :  { %p71_p8 = por %p70_p7, %p69_p6 }
  0x14   :  { %p72_p9 = pnand %p71_p8, %p65_p5 }
  0x16   :  { %75 = shalt.err (!%p72_p9)
}
  0x17   :  { %36 = dma.vmem_to_hbm [thread:$0]  %s34_s12, 256, %s107_s1, [#allocation4]  }
  0x18   :  { %86 = dma.done.wait [#allocation4], 256  }
  0x19   :  { %87 = vsyncadd [#allocation4], 4294967040 }
  0x1a   :  { %40 = vsyncpa [#allocation3], 1 }
  0x1b   :  { %41 = vsyncpa [#allocation4], 1 }

</bundles_post_ra>
